<compile_context>
chip_gen: v7x
topology: tpu7x:2x2x1
jax: 0.10.0
libtpu: 0.0.40
codegen_flags: <defaults>
</compile_context>

<pallas_src>
import functools
import jax
import jax.numpy as jnp
from jax.experimental import pallas as pl
from jax.experimental.pallas import tpu as pltpu


def _round_up(v, m):
    return ((v + m - 1) // m) * m


def _tile_cap():
    # 256 matches the 2x256x256 MXU of v6e/v7x; <=v5 chips have 128x128 MXUs.
    try:
        kind = jax.devices()[0].device_kind.lower()
        if any(t in kind for t in ("v2", "v3", "v4", "v5")):
            return 128
    except Exception:
        pass
    return 256


# ----------------------------- Pallas kernel ---------------------------------

def _circle_loss_kernel(frow_ref, fcol_ref, lrow_ref, lcol_ref,
                        op_ref, on_ref, accp_ref, accn_ref,
                        *, n_valid, n_padded, tb, tn, scale, margin):
    i = pl.program_id(0)          # row-tile axis  ("parallel")
    j = pl.program_id(1)          # col-tile axis  ("arbitrary", reduction)
    nj = pl.num_programs(1)

    @pl.when(j == 0)
    def _init():
        accp_ref[...] = jnp.zeros_like(accp_ref)
        accn_ref[...] = jnp.zeros_like(accn_ref)

    # Strictly-below-diagonal tiles contribute nothing under triu(k=1): skip all work.
    @pl.when(j >= i)
    def _compute():
        # similarity tile (tb, tn): rows @ cols^T, f32 accumulation on the MXU
        sim = jax.lax.dot_general(frow_ref[...], fcol_ref[...],
                                  (((1,), (1,)), ((), ())),
                                  preferred_element_type=jnp.float32)
        # raw label Gram tile: 0/1 operands -> exact small integers in f32
        m = jax.lax.dot_general(lrow_ref[...], lcol_ref[...],
                                (((1,), (1,)), ((), ())),
                                preferred_element_type=jnp.float32)

        rid = i * tb + jax.lax.broadcasted_iota(jnp.int32, (tb, tn), 0)
        cid = j * tn + jax.lax.broadcasted_iota(jnp.int32, (tb, tn), 1)
        valid = cid > rid                               # triu(diagonal=1)
        if n_padded != n_valid:                         # compile-time: zero-padded rows/cols
            valid &= (rid < n_valid) & (cid < n_valid)

        pos = valid & ((m == 1.0) | (m == 2.0))         # shares 1 or 2 labels
        neg = valid & (m == 0.0)                        # shares no label

        alpha_p = jnp.maximum(1.0 + margin - sim, 0.0)  # relu
        alpha_n = jnp.maximum(sim + margin, 0.0)
        tp = jnp.exp(-scale * alpha_p * (sim - (1.0 - margin)))
        tneg = jnp.exp(scale * alpha_n * (sim - margin))

        # VPU-only accumulation; reductions deferred to the last column tile
        accp_ref[...] += jnp.where(pos, tp, 0.0)
        accn_ref[...] += jnp.where(neg, tneg, 0.0)

    @pl.when(j == nj - 1)
    def _finalize():
        op_ref[...] = jnp.full(op_ref.shape, jnp.sum(accp_ref[...]), jnp.float32)
        on_ref[...] = jnp.full(on_ref.shape, jnp.sum(accn_ref[...]), jnp.float32)


# ----------------------------- Wrapper ---------------------------------------

@functools.partial(jax.jit,
                   static_argnames=("scale", "margin", "similarity", "use_bf16"))
def circle_loss(feats, labels, scale=1.0, margin=0.25, similarity="cos",
                use_bf16=True):
    if similarity not in ("cos", "dot"):
        raise ValueError("This similarity is not implemented.")
    B, D = feats.shape
    assert labels.shape[0] == B, (feats.shape, labels.shape)
    L = labels.shape[1]

    # bf16 sim error (~1e-2) is amplified inside exp(scale*...): gate on scale.
    mxu_bf16 = bool(use_bf16) and float(scale) <= 16.0
    in_dtype = jnp.bfloat16 if mxu_bf16 else jnp.float32

    f = feats.astype(jnp.float32)
    if similarity == "cos":                              # F.normalize (eps=1e-12), in f32
        nrm = jnp.sqrt(jnp.sum(f * f, axis=-1, keepdims=True))
        f = f / jnp.maximum(nrm, 1e-12)

    unit = 16 if mxu_bf16 else 8                         # bf16 sublane packing
    tb = min(_tile_cap(), _round_up(B, unit))
    tn = tb
    Bp = _round_up(B, tb)
    G = Bp // tb

    fp = jnp.pad(f, ((0, Bp - B), (0, 0))).astype(in_dtype)
    lp = jnp.pad(labels.astype(jnp.float32), ((0, Bp - B), (0, 0))).astype(in_dtype)

    kernel = functools.partial(
        _circle_loss_kernel, n_valid=B, n_padded=Bp, tb=tb, tn=tn,
        scale=float(scale), margin=float(margin))

    # VMEM budget from actual buffers (+2x headroom for per-step f32 temporaries)
    isz = 2 if mxu_bf16 else 4
    est = (2 * 2 * (tb * D + tb * L) * isz   # double-buffered row/col input tiles
           + 2 * tb * tn * 4                 # f32 accumulators
           + 2 * 2 * 8 * 128 * 4             # output blocks (double-buffered)
           + 12 * tb * tn * 4)               # per-step f32 temporaries
    vmem_limit = int(min(48 * 1024 * 1024, max(16 * 1024 * 1024, 2 * est)))

    out_p, out_n = pl.pallas_call(
        kernel,
        out_shape=(jax.ShapeDtypeStruct((G, 8, 128), jnp.float32),
                   jax.ShapeDtypeStruct((G, 8, 128), jnp.float32)),
        grid=(G, G),
        in_specs=[pl.BlockSpec((tb, D), lambda i, j: (i, 0)),   # feature row tile
                  pl.BlockSpec((tn, D), lambda i, j: (j, 0)),   # feature col tile
                  pl.BlockSpec((tb, L), lambda i, j: (i, 0)),   # label row tile
                  pl.BlockSpec((tn, L), lambda i, j: (j, 0))],  # label col tile
        out_specs=(pl.BlockSpec((1, 8, 128), lambda i, j: (i, 0, 0)),
                   pl.BlockSpec((1, 8, 128), lambda i, j: (i, 0, 0))),
        scratch_shapes=[pltpu.VMEM((tb, tn), jnp.float32),      # loss_p partial tile
                        pltpu.VMEM((tb, tn), jnp.float32)],     # loss_n partial tile
        compiler_params=pltpu.CompilerParams(
            dimension_semantics=("parallel", "arbitrary"),
            vmem_limit_bytes=vmem_limit),
    )(fp, fp, lp, lp)

    loss_p = jnp.sum(out_p[:, 0, 0])
    loss_n = jnp.sum(out_n[:, 0, 0])
    return jnp.log(1.0 + loss_p * loss_n)


# ----------------------------- Pure-JAX reference ----------------------------

def circle_loss_ref(feats, labels, scale=1.0, margin=0.25, similarity="cos"):
    feats = feats.astype(jnp.float32)
    labels = labels.astype(jnp.float32)
    mask = labels @ labels.T
    mask = jnp.where(mask == 2.0, jnp.ones_like(mask), mask)
    triu = jnp.triu(jnp.ones_like(mask), k=1)
    pos_sel = (mask * triu) == 1.0
    neg_sel = (jnp.abs(mask - 1.0) * triu) == 1.0
    if similarity == "cos":
        f = feats / jnp.maximum(
            jnp.linalg.norm(feats, axis=1, keepdims=True), 1e-12)
    else:
        f = feats
    sim = f @ f.T
    alpha_p = jnp.maximum(-sim + 1.0 + margin, 0.0)
    alpha_n = jnp.maximum(sim + margin, 0.0)
    lp = jnp.sum(jnp.where(pos_sel,
                           jnp.exp(-scale * alpha_p * (sim - (1.0 - margin))), 0.0))
    ln = jnp.sum(jnp.where(neg_sel,
                           jnp.exp(scale * alpha_n * (sim - margin)), 0.0))
    return jnp.log(1.0 + lp * ln)


# ----------------------------- Main -------------------------------------------

if __name__ == "__main__":
    B, D, NUM_CLASSES = 8, 32, 4
    key = jax.random.PRNGKey(0)
    kf, kl = jax.random.split(key)
    feats = jax.random.normal(kf, (B, D), dtype=jnp.float32)
    cls = jax.random.randint(kl, (B,), 0, NUM_CLASSES)
    labels = jax.nn.one_hot(cls, NUM_CLASSES, dtype=jnp.float32)

    loss = circle_loss(feats, labels, scale=1.0, margin=0.25, similarity="cos")
    loss = jax.block_until_ready(loss)

    ref = circle_loss_ref(feats, labels, scale=1.0, margin=0.25, similarity="cos")
    ref = jax.block_until_ready(ref)

    assert loss.shape == (), loss.shape
    assert bool(jnp.isfinite(loss))
    # bf16 MXU operands (f32 accumulation) -> small drift vs the f32 reference
    assert bool(jnp.allclose(loss, ref, rtol=5e-2, atol=5e-2)), (float(loss), float(ref))
    print("KERNEL_OK")
</pallas_src>

<mosaic_0001>
module attributes {stable_mosaic.version = 11 : i64} {
  func.func @_circle_loss_kernel(%arg0: i32, %arg1: i32, %arg2: memref<16x32xbf16, #tpu.memory_space<vmem>>, %arg3: memref<16x32xbf16, #tpu.memory_space<vmem>>, %arg4: memref<16x4xbf16, #tpu.memory_space<vmem>>, %arg5: memref<16x4xbf16, #tpu.memory_space<vmem>>, %arg6: memref<1x8x128xf32, #tpu.memory_space<vmem>>, %arg7: memref<1x8x128xf32, #tpu.memory_space<vmem>>, %arg8: memref<16x16xf32, #tpu.memory_space<vmem>>, %arg9: memref<16x16xf32, #tpu.memory_space<vmem>>) attributes {dimension_semantics = [#tpu.dimension_semantics<parallel>, #tpu.dimension_semantics<arbitrary>], iteration_bounds = array<i64: 1, 1>, scalar_prefetch = 0 : i64, scratch_operands = 2 : i64, tpu.core_type = #tpu.core_type<tc>, window_params = [{transform_indices = @transform_0, window_bounds = array<i64: 16, 32>}, {transform_indices = @transform_1, window_bounds = array<i64: 16, 32>}, {transform_indices = @transform_2, window_bounds = array<i64: 16, 4>}, {transform_indices = @transform_3, window_bounds = array<i64: 16, 4>}, {transform_indices = @transform_4, window_bounds = array<i64: 1, 8, 128>}, {transform_indices = @transform_5, window_bounds = array<i64: 1, 8, 128>}]} {
    %c0_i32 = arith.constant 0 : i32
    %0 = arith.cmpi eq, %arg1, %c0_i32 : i32
    %1 = arith.extui %0 : i1 to i32
    %c0_i32_0 = arith.constant 0 : i32
    %2 = arith.cmpi ne, %1, %c0_i32_0 : i32
    scf.if %2 {
      %cst = arith.constant 0.000000e+00 : f32
      %9 = vector.broadcast %cst : f32 to vector<16x16xf32>
      %c0 = arith.constant 0 : index
      %c0_4 = arith.constant 0 : index
      %10 = vector.load %arg8[%c0, %c0_4] : memref<16x16xf32, #tpu.memory_space<vmem>>, vector<16x16xf32>
      tpu.vector_store %arg8[%c0, %c0_4], %9 {strides = array<i32>} : memref<16x16xf32, #tpu.memory_space<vmem>>, vector<16x16xf32>,
      %cst_5 = arith.constant 0.000000e+00 : f32
      %11 = vector.broadcast %cst_5 : f32 to vector<16x16xf32>
      %c0_6 = arith.constant 0 : index
      %c0_7 = arith.constant 0 : index
      %12 = vector.load %arg9[%c0_6, %c0_7] : memref<16x16xf32, #tpu.memory_space<vmem>>, vector<16x16xf32>
      tpu.vector_store %arg9[%c0_6, %c0_7], %11 {strides = array<i32>} : memref<16x16xf32, #tpu.memory_space<vmem>>, vector<16x16xf32>,
    } else {
    }
    %3 = arith.cmpi sge, %arg1, %arg0 : i32
    %4 = arith.extui %3 : i1 to i32
    %c0_i32_1 = arith.constant 0 : i32
    %5 = arith.cmpi ne, %4, %c0_i32_1 : i32
    scf.if %5 {
      %c0 = arith.constant 0 : index
      %c0_4 = arith.constant 0 : index
      %9 = vector.load %arg2[%c0, %c0_4] : memref<16x32xbf16, #tpu.memory_space<vmem>>, vector<16x32xbf16>
      %c0_5 = arith.constant 0 : index
      %c0_6 = arith.constant 0 : index
      %10 = vector.load %arg3[%c0_5, %c0_6] : memref<16x32xbf16, #tpu.memory_space<vmem>>, vector<16x32xbf16>
      %cst = arith.constant dense<0.000000e+00> : vector<16x16xf32>
      %11 = tpu.matmul %9, %10, %cst {dimension_numbers = #tpu.dot_dimension_numbers<[1], [1], [0], [0], [0, 0, 1, 0], [], []>} : vector<16x32xbf16>, vector<16x32xbf16>, vector<16x16xf32> -> vector<16x16xf32>
      %c0_7 = arith.constant 0 : index
      %c0_8 = arith.constant 0 : index
      %12 = vector.load %arg4[%c0_7, %c0_8] : memref<16x4xbf16, #tpu.memory_space<vmem>>, vector<16x4xbf16>
      %c0_9 = arith.constant 0 : index
      %c0_10 = arith.constant 0 : index
      %13 = vector.load %arg5[%c0_9, %c0_10] : memref<16x4xbf16, #tpu.memory_space<vmem>>, vector<16x4xbf16>
      %cst_11 = arith.constant dense<0.000000e+00> : vector<16x16xf32>
      %14 = tpu.matmul %12, %13, %cst_11 {dimension_numbers = #tpu.dot_dimension_numbers<[1], [1], [0], [0], [0, 0, 1, 0], [], []>} : vector<16x4xbf16>, vector<16x4xbf16>, vector<16x16xf32> -> vector<16x16xf32>
      %c16_i32 = arith.constant 16 : i32
      %15 = arith.muli %arg0, %c16_i32 : i32
      %16 = tpu.iota {dimensions = array<i32: 0>} : vector<16x16xi32>
      %17 = vector.broadcast %15 : i32 to vector<16x16xi32>
      %18 = arith.addi %17, %16 : vector<16x16xi32>
      %c16_i32_12 = arith.constant 16 : i32
      %19 = arith.muli %arg1, %c16_i32_12 : i32
      %20 = tpu.iota {dimensions = array<i32: 1>} : vector<16x16xi32>
      %21 = vector.broadcast %19 : i32 to vector<16x16xi32>
      %22 = arith.addi %21, %20 : vector<16x16xi32>
      %23 = arith.cmpi sgt, %22, %18 : vector<16x16xi32>
      %c8_i32 = arith.constant 8 : i32
      %24 = vector.broadcast %c8_i32 : i32 to vector<16x16xi32>
      %25 = arith.cmpi slt, %18, %24 : vector<16x16xi32>
      %c8_i32_13 = arith.constant 8 : i32
      %26 = vector.broadcast %c8_i32_13 : i32 to vector<16x16xi32>
      %27 = arith.cmpi slt, %22, %26 : vector<16x16xi32>
      %28 = arith.andi %25, %27 : vector<16x16xi1>
      %29 = arith.andi %23, %28 : vector<16x16xi1>
      %cst_14 = arith.constant 1.000000e+00 : f32
      %30 = vector.broadcast %cst_14 : f32 to vector<16x16xf32>
      %31 = arith.cmpf oeq, %14, %30 : vector<16x16xf32>
      %cst_15 = arith.constant 2.000000e+00 : f32
      %32 = vector.broadcast %cst_15 : f32 to vector<16x16xf32>
      %33 = arith.cmpf oeq, %14, %32 : vector<16x16xf32>
      %34 = arith.ori %31, %33 : vector<16x16xi1>
      %35 = arith.andi %29, %34 : vector<16x16xi1>
      %cst_16 = arith.constant 0.000000e+00 : f32
      %36 = vector.broadcast %cst_16 : f32 to vector<16x16xf32>
      %37 = arith.cmpf oeq, %14, %36 : vector<16x16xf32>
      %38 = arith.andi %29, %37 : vector<16x16xi1>
      %cst_17 = arith.constant 1.250000e+00 : f32
      %39 = vector.broadcast %cst_17 : f32 to vector<16x16xf32>
      %40 = arith.subf %39, %11 : vector<16x16xf32>
      %cst_18 = arith.constant 0.000000e+00 : f32
      %41 = vector.broadcast %cst_18 : f32 to vector<16x16xf32>
      %42 = arith.maximumf %40, %41 : vector<16x16xf32>
      %cst_19 = arith.constant 2.500000e-01 : f32
      %43 = vector.broadcast %cst_19 : f32 to vector<16x16xf32>
      %44 = arith.addf %11, %43 : vector<16x16xf32>
      %cst_20 = arith.constant 0.000000e+00 : f32
      %45 = vector.broadcast %cst_20 : f32 to vector<16x16xf32>
      %46 = arith.maximumf %44, %45 : vector<16x16xf32>
      %cst_21 = arith.constant -1.000000e+00 : f32
      %47 = vector.broadcast %cst_21 : f32 to vector<16x16xf32>
      %48 = arith.mulf %47, %42 : vector<16x16xf32>
      %cst_22 = arith.constant 7.500000e-01 : f32
      %49 = vector.broadcast %cst_22 : f32 to vector<16x16xf32>
      %50 = arith.subf %11, %49 : vector<16x16xf32>
      %51 = arith.mulf %48, %50 : vector<16x16xf32>
      %52 = math.exp %51 : vector<16x16xf32>
      %cst_23 = arith.constant 1.000000e+00 : f32
      %53 = vector.broadcast %cst_23 : f32 to vector<16x16xf32>
      %54 = arith.mulf %53, %46 : vector<16x16xf32>
      %cst_24 = arith.constant 2.500000e-01 : f32
      %55 = vector.broadcast %cst_24 : f32 to vector<16x16xf32>
      %56 = arith.subf %11, %55 : vector<16x16xf32>
      %57 = arith.mulf %54, %56 : vector<16x16xf32>
      %58 = math.exp %57 : vector<16x16xf32>
      %c0_25 = arith.constant 0 : index
      %c0_26 = arith.constant 0 : index
      %59 = vector.load %arg8[%c0_25, %c0_26] : memref<16x16xf32, #tpu.memory_space<vmem>>, vector<16x16xf32>
      %cst_27 = arith.constant 0.000000e+00 : f32
      %60 = vector.broadcast %cst_27 : f32 to vector<16x16xf32>
      %61 = arith.select %35, %52, %60 : vector<16x16xi1>, vector<16x16xf32>
      %62 = arith.addf %59, %61 : vector<16x16xf32>
      %c0_28 = arith.constant 0 : index
      %c0_29 = arith.constant 0 : index
      %63 = vector.load %arg8[%c0_28, %c0_29] : memref<16x16xf32, #tpu.memory_space<vmem>>, vector<16x16xf32>
      tpu.vector_store %arg8[%c0_28, %c0_29], %62 {strides = array<i32>} : memref<16x16xf32, #tpu.memory_space<vmem>>, vector<16x16xf32>,
      %c0_30 = arith.constant 0 : index
      %c0_31 = arith.constant 0 : index
      %64 = vector.load %arg9[%c0_30, %c0_31] : memref<16x16xf32, #tpu.memory_space<vmem>>, vector<16x16xf32>
      %cst_32 = arith.constant 0.000000e+00 : f32
      %65 = vector.broadcast %cst_32 : f32 to vector<16x16xf32>
      %66 = arith.select %38, %58, %65 : vector<16x16xi1>, vector<16x16xf32>
      %67 = arith.addf %64, %66 : vector<16x16xf32>
      %c0_33 = arith.constant 0 : index
      %c0_34 = arith.constant 0 : index
      %68 = vector.load %arg9[%c0_33, %c0_34] : memref<16x16xf32, #tpu.memory_space<vmem>>, vector<16x16xf32>
      tpu.vector_store %arg9[%c0_33, %c0_34], %67 {strides = array<i32>} : memref<16x16xf32, #tpu.memory_space<vmem>>, vector<16x16xf32>,
    } else {
    }
    %c0_i32_2 = arith.constant 0 : i32
    %6 = arith.cmpi eq, %arg1, %c0_i32_2 : i32
    %7 = arith.extui %6 : i1 to i32
    %c0_i32_3 = arith.constant 0 : i32
    %8 = arith.cmpi ne, %7, %c0_i32_3 : i32
    scf.if %8 {
      %c0 = arith.constant 0 : index
      %c0_4 = arith.constant 0 : index
      %9 = vector.load %arg8[%c0, %c0_4] : memref<16x16xf32, #tpu.memory_space<vmem>>, vector<16x16xf32>
      %10 = vector.shape_cast %9 : vector<16x16xf32> to vector<1x16x16xf32>
      %cst = arith.constant dense<0.000000e+00> : vector<1xf32>
      %11 = vector.multi_reduction <add>, %10, %cst [1, 2] : vector<1x16x16xf32> to vector<1xf32>
      %12 = vector.shape_cast %11 : vector<1xf32> to vector<1x1x1xf32>
      %13 = vector.extract %12[0, 0, 0] : f32 from vector<1x1x1xf32>
      %14 = vector.broadcast %13 : f32 to vector<1x8x128xf32>
      %c0_5 = arith.constant 0 : index
      %c0_6 = arith.constant 0 : index
      %c0_7 = arith.constant 0 : index
      %15 = vector.load %arg6[%c0_5, %c0_6, %c0_7] : memref<1x8x128xf32, #tpu.memory_space<vmem>>, vector<1x8x128xf32>
      tpu.vector_store %arg6[%c0_5, %c0_6, %c0_7], %14 {strides = array<i32>} : memref<1x8x128xf32, #tpu.memory_space<vmem>>, vector<1x8x128xf32>,
      %c0_8 = arith.constant 0 : index
      %c0_9 = arith.constant 0 : index
      %16 = vector.load %arg9[%c0_8, %c0_9] : memref<16x16xf32, #tpu.memory_space<vmem>>, vector<16x16xf32>
      %17 = vector.shape_cast %16 : vector<16x16xf32> to vector<1x16x16xf32>
      %cst_10 = arith.constant dense<0.000000e+00> : vector<1xf32>
      %18 = vector.multi_reduction <add>, %17, %cst_10 [1, 2] : vector<1x16x16xf32> to vector<1xf32>
      %19 = vector.shape_cast %18 : vector<1xf32> to vector<1x1x1xf32>
      %20 = vector.extract %19[0, 0, 0] : f32 from vector<1x1x1xf32>
      %21 = vector.broadcast %20 : f32 to vector<1x8x128xf32>
      %c0_11 = arith.constant 0 : index
      %c0_12 = arith.constant 0 : index
      %c0_13 = arith.constant 0 : index
      %22 = vector.load %arg7[%c0_11, %c0_12, %c0_13] : memref<1x8x128xf32, #tpu.memory_space<vmem>>, vector<1x8x128xf32>
      tpu.vector_store %arg7[%c0_11, %c0_12, %c0_13], %21 {strides = array<i32>} : memref<1x8x128xf32, #tpu.memory_space<vmem>>, vector<1x8x128xf32>,
    } else {
    }
    return
  }
  func.func @transform_0(%arg0: i32, %arg1: i32) -> (i32, i32) {
    %c0_i32 = arith.constant 0 : i32
    %c0_i32_0 = arith.constant 0 : i32
    return %arg0, %c0_i32 : i32, i32
  }
  func.func @transform_1(%arg0: i32, %arg1: i32) -> (i32, i32) {
    %c0_i32 = arith.constant 0 : i32
    %c0_i32_0 = arith.constant 0 : i32
    return %arg1, %c0_i32 : i32, i32
  }
  func.func @transform_2(%arg0: i32, %arg1: i32) -> (i32, i32) {
    %c0_i32 = arith.constant 0 : i32
    %c0_i32_0 = arith.constant 0 : i32
    return %arg0, %c0_i32 : i32, i32
  }
  func.func @transform_3(%arg0: i32, %arg1: i32) -> (i32, i32) {
    %c0_i32 = arith.constant 0 : i32
    %c0_i32_0 = arith.constant 0 : i32
    return %arg1, %c0_i32 : i32, i32
  }
  func.func @transform_4(%arg0: i32, %arg1: i32) -> (i32, i32, i32) {
    %c0_i32 = arith.constant 0 : i32
    %c0_i32_0 = arith.constant 0 : i32
    %c0_i32_1 = arith.constant 0 : i32
    return %arg0, %c0_i32, %c0_i32_0 : i32, i32, i32
  }
  func.func @transform_5(%arg0: i32, %arg1: i32) -> (i32, i32, i32) {
    %c0_i32 = arith.constant 0 : i32
    %c0_i32_0 = arith.constant 0 : i32
    %c0_i32_1 = arith.constant 0 : i32
    return %arg0, %c0_i32, %c0_i32_0 : i32, i32, i32
  }
}

</mosaic_0001>

<bundles_post_ra>
// kernel: circle_loss.1
= control target key start
LH: loop header
LB: loop body
LE: loop exit
PB: predicated region body
PF: predicated region fallthrough
CT: control target
= control target key end

     0   :  { %vm24_vm0 = vcmask 130048   ;;  %vm47_vm1 = vcmask 261120   ;;  %v317_v0 = vmov 0.0   ;;  %vm318_vm2 = vmmov 0   ;;  %s381_s1 = inlined_call_operand.vmem [shape: bf16[16,32], index: 1, kind: input, shape index: {}, may-alias: {0,1}]   ;;  %s382_s3 = inlined_call_operand.vmem [shape: bf16[16,4], index: 3, kind: input, shape index: {}, may-alias: {2,3}]   ;;  %s383_s0 = inlined_call_operand.vmem [shape: bf16[16,32], index: 0, kind: input, shape index: {}, may-alias: {0,1}]   ;;  %s384_s2 = inlined_call_operand.vmem [shape: bf16[16,4], index: 2, kind: input, shape index: {}, may-alias: {2,3}]   ;;  %s385_s4 = inlined_call_operand.vmem [shape: f32[1,8,128], index: 4, kind: output, shape index: {0}]   ;;  %s386_s5 = inlined_call_operand.vmem [shape: f32[1,8,128], index: 5, kind: output, shape index: {1}]  }
   0x1   :  { %26 = vst.msk [vmem:[#allocation2 + $0x8] sm:$0xff] %vm24_vm0, %v317_v0  ;;  %28 = vst.msk [vmem:[#allocation3 + $0x8] sm:$0xff] %vm24_vm0, %v317_v0  ;;  %291 = vmatprep.subr.bf16.mxu0 %v317_v0  ;;  %v309_v1 = vld [vmem:[%s381_s1] sm:$0xff]   ;;  %293 = vmatprep.mubr.msk.bf16.mxu0 %vm318_vm2, %v317_v0  ;;  %vm109_vm3 = vcmask 31744   ;;  %v158_v19 = vlaneseq }
   0x2   :  { %25 = vst.msk [vmem:[#allocation2] sm:$0xff] %vm24_vm0, %v317_v0  ;;  %27 = vst.msk [vmem:[#allocation3] sm:$0xff] %vm24_vm0, %v317_v0  ;;  %297 = vmatprep.subr.bf16.mxu1 %v317_v0  ;;  %299 = vmatprep.mubr.msk.bf16.mxu1 %vm318_vm2, %v317_v0  ;;  %v52_v2 = vsel %vm47_vm1, %v309_v1, 0  ;;  %v311_v3 = vld [vmem:[%s382_s3] sm:$0xff]  }
   0x3   :  { %292 = vmatpush3.bf16.xpose.msra.mxu0 %v52_v2  ;;  %v114_v4 = vsel %vm109_vm3, %v311_v3, 0  ;;  %v310_v5 = vld [vmem:[%s383_s0] sm:$0xff]   ;;  %v159_v28 = vshrl.u32 %v158_v19, 7  ;;  %v166_v29 = vand.u32 127, %v158_v19 }
   0x4   :  { %298 = vmatpush3.bf16.xpose.msra.mxu1 %v114_v4  ;;  %v312_v8 = vld [vmem:[%s384_s2] sm:$0xff]  }
   0x5   :  { %vm169_vm4 = vcmp.gt.s32.totalorder %v166_v29, %v159_v28  ;;  %vm173_vm5 = vcmp.lt.s32.totalorder %v166_v29, 8 }
   0x6   :  { %vm176_vm8 = vmand %vm169_vm4, %vm173_vm5 }
   0x8   :  { %v217_v6 = vld [vmem:[#allocation2 + $0x8] sm:$0xff]  ;;  %v226_v7 = vld [vmem:[#allocation3 + $0x8] sm:$0xff] }
   0x9   :  { %224 = vst.msk [vmem:[#allocation2 + $0x8] sm:$0xff] %vm24_vm0, %v217_v6  ;;  %232 = vst.msk [vmem:[#allocation3 + $0x8] sm:$0xff] %vm24_vm0, %v226_v7  ;;  %v225_v31 = vld [vmem:[#allocation3] sm:$0xff]  ;;  %v216_v33 = vld [vmem:[#allocation2] sm:$0xff] }
   0xa   :  { %294 = vmatmul.mubr.msk.bf16.vlgmr.msra.gmra.mrb[0].mxu0 %vm47_vm1, %v310_v5 }
   0xb   :  { %300 = vmatmul.mubr.msk.bf16.vlgmr.msra.gmra.mrb[0].mxu1 %vm109_vm3, %v312_v8 }
  0x10   :  { %v237_v39 = vld [vmem:[#allocation2 + $0x8] sm:$0xff]  ;;  %v254_v43 = vld [vmem:[#allocation3 + $0x8] sm:$0xff] }
  0x11   :  { %v240_v40 = vsel %vm24_vm0, %v237_v39, 0.0  ;;  %v256_v47 = vsel %vm24_vm0, %v254_v43, 0.0 }
  0xdd   :  { %v88_v9 = vpop.f32.mrb[0].mxu0 }
  0xde   :  { %v190_v10 = vsub.f32 1.25, %v88_v9  ;;  %v194_v11 = vadd.f32 0.25, %v88_v9  ;;  %v295_v12 = vpop.f32.mrb[1].mxu0  ;;  %v150_v14 = vpop.f32.mrb[0].mxu1  ;;  %v285_v17 = vadd.f32 -0.25, %v88_v9  ;;  %v283_v23 = vadd.f32 -0.75, %v88_v9 }
  0xdf   :  { %v91_v13 = vpop.f32.mrb[2].mxu0  ;;  %v301_v20 = vpop.f32.mrb[1].mxu1  ;;  %vm178_vm6 = vcmp.eq.f32.partialorder %v150_v14, 1.0  ;;  %vm180_vm7 = vcmp.eq.f32.partialorder %v150_v14, 2.0  ;;  %vm186_vm9 = vcmp.eq.f32.partialorder %v150_v14, 0.0 }
  0xe0   :  { %v192_v15 = vmax.f32 %v190_v10, 0.0  ;;  %v196_v16 = vmax.f32 %v194_v11, 0.0  ;;  %v296_v18 = vpop.f32.mrb[3].mxu0  ;;  %v153_v21 = vpop.f32.mrb[2].mxu1  ;;  %vm182_vm10 = vmor %vm178_vm6, %vm180_vm7 }
  0xe1   :  { %v302_v25 = vpop.f32.mrb[3].mxu1  ;;  %vm188_vm11 = vmand %vm176_vm8, %vm186_vm9 }
  0xe2   :  { %v198_v22 = vmul.f32 -1.0, %v192_v15  ;;  %v210_v24 = vmul.f32 %v285_v17, %v196_v16  ;;  %vm184_vm12 = vmand %vm176_vm8, %vm182_vm10 }
  0xe4   :  { %v202_v26 = vmul.f32 %v283_v23, %v198_v22  ;;  %v212_v27 = vmul.f32 1.442695, %v210_v24 }
  0xe6   :  { %v204_v30 = vmul.f32 1.442695, %v202_v26  ;;  %313 = vpow2.f32 %v212_v27 }
  0xe8   :  { %315 = vpow2.f32 %v204_v30 }
  0xf0   :  { %v314_v32 = vpop.eup %313 }
  0xf1   :  { %v227_v34 = vsel %vm188_vm11, %v314_v32, 0.0 }
  0xf2   :  { %v316_v35 = vpop.eup %315  ;;  %v229_v36 = vadd.f32 %v227_v34, %v225_v31 }
  0xf3   :  { %v218_v37 = vsel %vm184_vm12, %v316_v35, 0.0 }
  0xf4   :  { %v220_v38 = vadd.f32 %v218_v37, %v216_v33  ;;  %231 = vst.msk [vmem:[#allocation3] sm:$0xff] %vm24_vm0, %v229_v36 }
  0xf6   :  { %223 = vst.msk [vmem:[#allocation2] sm:$0xff] %vm24_vm0, %v220_v38 }
  0xfb   :  { %v253_v42 = vld [vmem:[#allocation3] sm:$0xff] }
  0xfc   :  { %v255_v46 = vsel %vm24_vm0, %v253_v42, 0.0 }
  0xfd   :  { %v236_v41 = vld [vmem:[#allocation2] sm:$0xff]  ;;  %v257_v48 = vadd.f32 %v256_v47, %v255_v46 }
  0xfe   :  { %v239_v44 = vsel %vm24_vm0, %v236_v41, 0.0 }
  0xff   :  { %v241_v45 = vadd.f32 %v240_v40, %v239_v44 }
 0x101   :  { %242 = vadd.xlane.f32.xlu0 %v241_v45 }
 0x105   :  { %258 = vadd.xlane.f32.xlu0 %v257_v48 }
 0x18e   :  { %v243_v49 = vpop.xlane.xlu0 %242 }
 0x18f   :  { %v244_v50 = vrot.slane %v243_v49, 4 }
 0x191   :  { %v245_v51 = vadd.f32 %v244_v50, %v243_v49 }
 0x192   :  { %v259_v52 = vpop.xlane.xlu0 %258 }
 0x193   :  { %v246_v53 = vrot.slane %v245_v51, 2  ;;  %v260_v54 = vrot.slane %v259_v52, 4 }
 0x195   :  { %v261_v55 = vadd.f32 %v260_v54, %v259_v52  ;;  %v247_v56 = vadd.f32 %v246_v53, %v245_v51 }
 0x197   :  { %v262_v57 = vrot.slane %v261_v55, 2  ;;  %v248_v58 = vrot.slane %v247_v56, 1 }
 0x199   :  { %v263_v59 = vadd.f32 %v262_v57, %v261_v55  ;;  %v249_v60 = vadd.f32 %v248_v58, %v247_v56 }
 0x19b   :  { %303 = vpush %v249_v60  ;;  %v264_v61 = vrot.slane %v263_v59, 1 }
 0x19d   :  { %v265_v62 = vadd.f32 %v264_v61, %v263_v59 }
 0x19f   :  { %305 = vpush %v265_v62 }
 0x1cc   :  { %s304_s0 = spop %303 }
 0x1cd   :  { %v251_v63 = vstv %s304_s0 }
 0x1ce   :  { %252 = vst [vmem:[%s385_s4] sm:$0xff] %v251_v63 }
 0x1d0   :  { %s306_s25 = spop %305 }
 0x1d1   :  { %v267_v0 = vstv %s306_s25 }
 0x1d2   :  { %268 = vst [vmem:[%s386_s5] sm:$0xff] %v267_v0 }

</bundles_post_ra>
